<compile_context>
chip_gen: v6e
topology: v6e:2x2x1
jax: 0.10.0
libtpu: 0.0.40
codegen_flags: <defaults>
</compile_context>

<pallas_src>
import jax
import jax.numpy as jnp
from jax.experimental import pallas as pl
from jax.experimental.pallas import tpu as pltpu


def _round_up(x, m):
    return ((x + m - 1) // m) * m


def _choose_batch_tile(batch, batch_tile):
    """Pick a sublane-aligned (multiple-of-8) batch tile.

    Prefers exact divisors of `batch` (no input padding / extra HBM copy) and
    keeps >= 2 grid steps for large batches so the "parallel" batch axis can
    shard across both v7x TensorCores.  Returns (tile, padded_batch).
    """
    b8 = _round_up(batch, 8)
    cap = max(8, (min(int(batch_tile), b8) // 8) * 8)
    # If everything would fit in one step and the batch is big enough, split
    # into (at least) two steps for v7x megacore; harmless on v5e/v6e.
    if batch >= 16 and cap >= batch:
        cap = min(cap, _round_up((batch + 1) // 2, 8))
    if batch % 8 == 0:
        # Largest multiple-of-8 divisor of batch that fits under the cap.
        for t in range(cap, 7, -8):
            if batch % t == 0:
                return t, batch
    return cap, _round_up(batch, cap)


def gaussian_policy_kernel(
    state_ref,        # [tB, S]    f32
    w1_ref, b1_ref,   # [S,  Hp]   bf16, [1, Hp]   f32
    w2_ref, b2_ref,   # [Hp, Hp]   bf16, [1, Hp]   f32
    wh_ref, bh_ref,   # [Hp, OUTP] bf16, [1, OUTP] f32   (mean|log_std|0-pad)
    lo_ref, hi_ref,   # [1, OUTP]  f32  per-lane clamp bounds
    out_ref,          # [tB, OUTP] f32  packed (mean | log_std | 0-pad)
):
    x = state_ref[...].astype(jnp.bfloat16)

    # net: Linear -> ReLU -> Linear -> ReLU  (bf16 MXU operands, f32 acc)
    h1 = jnp.dot(x, w1_ref[...], preferred_element_type=jnp.float32) + b1_ref[...]
    h1 = jnp.maximum(h1, 0.0)
    h2 = jnp.dot(h1.astype(jnp.bfloat16), w2_ref[...],
                 preferred_element_type=jnp.float32) + b2_ref[...]
    h2 = jnp.maximum(h2, 0.0)

    # fused heads: one matmul -> [tB, OUTP]; per-lane clamp bounds implement
    # the log_std clamp (mean / padded lanes get -inf/+inf bounds).
    head = jnp.dot(h2.astype(jnp.bfloat16), wh_ref[...],
                   preferred_element_type=jnp.float32) + bh_ref[...]
    out_ref[...] = jnp.clip(head, lo_ref[...], hi_ref[...]).astype(out_ref.dtype)


def gaussian_policy_forward(state, params, *, log_std_min=-20.0, log_std_max=2.0,
                            batch_tile=2048):
    """Pallas implementation of GaussianPolicy.forward -> (mean, log_std)."""
    w1, b1, w2, b2, wm, bm, ws, bs = params
    B, S = state.shape
    H = w1.shape[1]
    A = wm.shape[1]

    # --- Lane padding: hidden to a multiple of 128, packed head to >=128.
    Hp = _round_up(H, 128)
    OUT = 2 * A
    OUTP = _round_up(max(OUT, 128), 128)

    def pad2(x, rows, cols):
        return jnp.pad(x, ((0, rows - x.shape[0]), (0, cols - x.shape[1])))

    def pad_row(x, cols):
        return jnp.pad(x, (0, cols - x.shape[0])).reshape(1, cols).astype(jnp.float32)

    # bf16 matmul operands, f32 biases (accumulation & elementwise stay f32).
    w1p = pad2(w1, S, Hp).astype(jnp.bfloat16)
    w2p = pad2(w2, Hp, Hp).astype(jnp.bfloat16)
    whp = pad2(jnp.concatenate([wm, ws], axis=1), Hp, OUTP).astype(jnp.bfloat16)
    b1p = pad_row(b1, Hp)
    b2p = pad_row(b2, Hp)
    bhp = pad_row(jnp.concatenate([bm, bs], axis=0), OUTP)

    # Per-lane clamp bounds: only the real log_std columns get the clamp.
    col = jnp.arange(OUTP)
    is_log_std = (col >= A) & (col < OUT)
    lo = jnp.where(is_log_std, jnp.float32(log_std_min), -jnp.inf).reshape(1, OUTP)
    hi = jnp.where(is_log_std, jnp.float32(log_std_max), jnp.inf).reshape(1, OUTP)
    lo = lo.astype(jnp.float32)
    hi = hi.astype(jnp.float32)

    # --- Batch tiling: grid over B, weights VMEM-resident across iterations.
    # VMEM-aware cap on the tile (rough per-row f32 working set: activations,
    # bf16 copies, packed output, double-buffered output).
    row_bytes = 4 * (S + 3 * Hp + 3 * OUTP)
    vmem_rows = max(8, (24 * 1024 * 1024) // max(row_bytes, 1))
    tB, Bp = _choose_batch_tile(B, min(int(batch_tile), vmem_rows))
    if Bp != B:
        # Ragged tail only (divisor tiles avoid this in the common case).
        state = jnp.pad(state, ((0, Bp - B), (0, 0)))
    grid = (Bp // tB,)

    resident = lambda shape: pl.BlockSpec(shape, lambda i: (0, 0))

    packed = pl.pallas_call(
        gaussian_policy_kernel,
        out_shape=jax.ShapeDtypeStruct((Bp, OUTP), jnp.float32),
        grid=grid,
        in_specs=[
            pl.BlockSpec((tB, S), lambda i: (i, 0)),      # state: streamed by batch
            resident((S, Hp)), resident((1, Hp)),          # layer 1
            resident((Hp, Hp)), resident((1, Hp)),         # layer 2
            resident((Hp, OUTP)), resident((1, OUTP)),     # fused heads
            resident((1, OUTP)), resident((1, OUTP)),      # clamp lo / hi
        ],
        out_specs=pl.BlockSpec((tB, OUTP), lambda i: (i, 0)),
        compiler_params=pltpu.CompilerParams(
            dimension_semantics=("parallel",),
        ),
    )(state, w1p, b1p, w2p, b2p, whp, bhp, lo, hi)

    mean = packed[:B, :A]
    log_std = packed[:B, A:OUT]
    return mean, log_std


def init_params(key, state_dim, hidden_dim, action_dim):
    """PyTorch-Linear-style init (U(-1/sqrt(fan_in), 1/sqrt(fan_in))).

    Weights are stored as [in, out] (transposed relative to torch.nn.Linear).
    """
    def linear(k, fan_in, fan_out):
        kw, kb = jax.random.split(k)
        bound = 1.0 / jnp.sqrt(fan_in)
        w = jax.random.uniform(kw, (fan_in, fan_out), jnp.float32, -bound, bound)
        b = jax.random.uniform(kb, (fan_out,), jnp.float32, -bound, bound)
        return w, b

    k1, k2, k3, k4 = jax.random.split(key, 4)
    w1, b1 = linear(k1, state_dim, hidden_dim)
    w2, b2 = linear(k2, hidden_dim, hidden_dim)
    wm, bm = linear(k3, hidden_dim, action_dim)
    ws, bs = linear(k4, hidden_dim, action_dim)
    return (w1, b1, w2, b2, wm, bm, ws, bs)


def reference_forward(state, params, log_std_min=-20.0, log_std_max=2.0):
    w1, b1, w2, b2, wm, bm, ws, bs = params
    h = jnp.maximum(state @ w1 + b1, 0.0)
    h = jnp.maximum(h @ w2 + b2, 0.0)
    mean = h @ wm + bm
    log_std = jnp.clip(h @ ws + bs, log_std_min, log_std_max)
    return mean, log_std


if __name__ == "__main__":
    state_dim, action_dim, hidden_dim = 16, 8, 32
    batch = 4

    key = jax.random.PRNGKey(0)
    k_params, k_state = jax.random.split(key)
    params = init_params(k_params, state_dim, hidden_dim, action_dim)
    state = jax.random.normal(k_state, (batch, state_dim), jnp.float32)

    mean, log_std = gaussian_policy_forward(state, params)
    jax.block_until_ready((mean, log_std))

    ref_mean, ref_log_std = reference_forward(state, params)
    assert mean.shape == (batch, action_dim)
    assert log_std.shape == (batch, action_dim)
    # bf16 matmul operands => looser tolerance than pure-f32.
    assert jnp.allclose(mean, ref_mean, atol=5e-2, rtol=5e-2)
    assert jnp.allclose(log_std, ref_log_std, atol=5e-2, rtol=5e-2)

    # Multi-step pipeline with a divisor tile (no input padding): B=1000.
    big_state = jax.random.normal(jax.random.PRNGKey(1), (1000, state_dim), jnp.float32)
    bm_, bs_ = gaussian_policy_forward(big_state, params)
    jax.block_until_ready((bm_, bs_))
    rbm, rbs = reference_forward(big_state, params)
    assert bm_.shape == (1000, action_dim) and bs_.shape == (1000, action_dim)
    assert jnp.allclose(bm_, rbm, atol=5e-2, rtol=5e-2)
    assert jnp.allclose(bs_, rbs, atol=5e-2, rtol=5e-2)

    # Ragged batch + non-8-aligned user tile: exercises the padded-tail path.
    rag_state = jax.random.normal(jax.random.PRNGKey(2), (1003, state_dim), jnp.float32)
    rm_, rs_ = gaussian_policy_forward(rag_state, params, batch_tile=250)
    jax.block_until_ready((rm_, rs_))
    rrm, rrs = reference_forward(rag_state, params)
    assert rm_.shape == (1003, action_dim) and rs_.shape == (1003, action_dim)
    assert jnp.allclose(rm_, rrm, atol=5e-2, rtol=5e-2)
    assert jnp.allclose(rs_, rrs, atol=5e-2, rtol=5e-2)

    print("KERNEL_OK")
</pallas_src>

<mosaic_0001>
module attributes {stable_mosaic.version = 11 : i64} {
  func.func @gaussian_policy_kernel(%arg0: i32, %arg1: memref<8x16xf32, #tpu.memory_space<vmem>>, %arg2: memref<16x128xbf16, #tpu.memory_space<vmem>>, %arg3: memref<1x128xf32, #tpu.memory_space<vmem>>, %arg4: memref<128x128xbf16, #tpu.memory_space<vmem>>, %arg5: memref<1x128xf32, #tpu.memory_space<vmem>>, %arg6: memref<128x128xbf16, #tpu.memory_space<vmem>>, %arg7: memref<1x128xf32, #tpu.memory_space<vmem>>, %arg8: memref<1x128xf32, #tpu.memory_space<vmem>>, %arg9: memref<1x128xf32, #tpu.memory_space<vmem>>, %arg10: memref<8x128xf32, #tpu.memory_space<vmem>>) attributes {dimension_semantics = [#tpu.dimension_semantics<parallel>], iteration_bounds = array<i64: 1>, scalar_prefetch = 0 : i64, scratch_operands = 0 : i64, tpu.core_type = #tpu.core_type<tc>, window_params = [{transform_indices = @transform_0, window_bounds = array<i64: 8, 16>}, {pipeline_mode = #tpu.pipeline_mode<synchronous>, transform_indices = @transform_1, window_bounds = array<i64: 16, 128>}, {pipeline_mode = #tpu.pipeline_mode<synchronous>, transform_indices = @transform_2, window_bounds = array<i64: 1, 128>}, {pipeline_mode = #tpu.pipeline_mode<synchronous>, transform_indices = @transform_3, window_bounds = array<i64: 128, 128>}, {pipeline_mode = #tpu.pipeline_mode<synchronous>, transform_indices = @transform_4, window_bounds = array<i64: 1, 128>}, {pipeline_mode = #tpu.pipeline_mode<synchronous>, transform_indices = @transform_5, window_bounds = array<i64: 128, 128>}, {pipeline_mode = #tpu.pipeline_mode<synchronous>, transform_indices = @transform_6, window_bounds = array<i64: 1, 128>}, {pipeline_mode = #tpu.pipeline_mode<synchronous>, transform_indices = @transform_7, window_bounds = array<i64: 1, 128>}, {pipeline_mode = #tpu.pipeline_mode<synchronous>, transform_indices = @transform_8, window_bounds = array<i64: 1, 128>}, {transform_indices = @transform_9, window_bounds = array<i64: 8, 128>}]} {
    %c0 = arith.constant 0 : index
    %c0_0 = arith.constant 0 : index
    %0 = vector.load %arg1[%c0, %c0_0] : memref<8x16xf32, #tpu.memory_space<vmem>>, vector<8x16xf32>
    %1 = arith.truncf %0 : vector<8x16xf32> to vector<8x16xbf16>
    %c0_1 = arith.constant 0 : index
    %c0_2 = arith.constant 0 : index
    %2 = vector.load %arg2[%c0_1, %c0_2] : memref<16x128xbf16, #tpu.memory_space<vmem>>, vector<16x128xbf16>
    %cst = arith.constant dense<0.000000e+00> : vector<8x128xf32>
    %3 = tpu.matmul %1, %2, %cst {dimension_numbers = #tpu.dot_dimension_numbers<[1], [0], [0], [1], [0, 0, 1, 1], [], []>} : vector<8x16xbf16>, vector<16x128xbf16>, vector<8x128xf32> -> vector<8x128xf32>
    %c0_3 = arith.constant 0 : index
    %c0_4 = arith.constant 0 : index
    %4 = vector.load %arg3[%c0_3, %c0_4] : memref<1x128xf32, #tpu.memory_space<vmem>>, vector<1x128xf32>
    %5 = vector.broadcast %4 : vector<1x128xf32> to vector<8x128xf32>
    %6 = arith.addf %3, %5 : vector<8x128xf32>
    %cst_5 = arith.constant 0.000000e+00 : f32
    %7 = vector.broadcast %cst_5 : f32 to vector<8x128xf32>
    %8 = arith.maximumf %6, %7 : vector<8x128xf32>
    %9 = arith.truncf %8 : vector<8x128xf32> to vector<8x128xbf16>
    %c0_6 = arith.constant 0 : index
    %c0_7 = arith.constant 0 : index
    %10 = vector.load %arg4[%c0_6, %c0_7] : memref<128x128xbf16, #tpu.memory_space<vmem>>, vector<128x128xbf16>
    %cst_8 = arith.constant dense<0.000000e+00> : vector<8x128xf32>
    %11 = tpu.matmul %9, %10, %cst_8 {dimension_numbers = #tpu.dot_dimension_numbers<[1], [0], [0], [1], [0, 0, 1, 1], [], []>} : vector<8x128xbf16>, vector<128x128xbf16>, vector<8x128xf32> -> vector<8x128xf32>
    %c0_9 = arith.constant 0 : index
    %c0_10 = arith.constant 0 : index
    %12 = vector.load %arg5[%c0_9, %c0_10] : memref<1x128xf32, #tpu.memory_space<vmem>>, vector<1x128xf32>
    %13 = vector.broadcast %12 : vector<1x128xf32> to vector<8x128xf32>
    %14 = arith.addf %11, %13 : vector<8x128xf32>
    %cst_11 = arith.constant 0.000000e+00 : f32
    %15 = vector.broadcast %cst_11 : f32 to vector<8x128xf32>
    %16 = arith.maximumf %14, %15 : vector<8x128xf32>
    %17 = arith.truncf %16 : vector<8x128xf32> to vector<8x128xbf16>
    %c0_12 = arith.constant 0 : index
    %c0_13 = arith.constant 0 : index
    %18 = vector.load %arg6[%c0_12, %c0_13] : memref<128x128xbf16, #tpu.memory_space<vmem>>, vector<128x128xbf16>
    %cst_14 = arith.constant dense<0.000000e+00> : vector<8x128xf32>
    %19 = tpu.matmul %17, %18, %cst_14 {dimension_numbers = #tpu.dot_dimension_numbers<[1], [0], [0], [1], [0, 0, 1, 1], [], []>} : vector<8x128xbf16>, vector<128x128xbf16>, vector<8x128xf32> -> vector<8x128xf32>
    %c0_15 = arith.constant 0 : index
    %c0_16 = arith.constant 0 : index
    %20 = vector.load %arg7[%c0_15, %c0_16] : memref<1x128xf32, #tpu.memory_space<vmem>>, vector<1x128xf32>
    %21 = vector.broadcast %20 : vector<1x128xf32> to vector<8x128xf32>
    %22 = arith.addf %19, %21 : vector<8x128xf32>
    %c0_17 = arith.constant 0 : index
    %c0_18 = arith.constant 0 : index
    %23 = vector.load %arg8[%c0_17, %c0_18] : memref<1x128xf32, #tpu.memory_space<vmem>>, vector<1x128xf32>
    %c0_19 = arith.constant 0 : index
    %c0_20 = arith.constant 0 : index
    %24 = vector.load %arg9[%c0_19, %c0_20] : memref<1x128xf32, #tpu.memory_space<vmem>>, vector<1x128xf32>
    %25 = vector.broadcast %23 : vector<1x128xf32> to vector<8x128xf32>
    %26 = arith.maximumf %25, %22 : vector<8x128xf32>
    %27 = vector.broadcast %24 : vector<1x128xf32> to vector<8x128xf32>
    %28 = arith.minimumf %27, %26 : vector<8x128xf32>
    %c0_21 = arith.constant 0 : index
    %c0_22 = arith.constant 0 : index
    %29 = vector.load %arg10[%c0_21, %c0_22] : memref<8x128xf32, #tpu.memory_space<vmem>>, vector<8x128xf32>
    tpu.vector_store %arg10[%c0_21, %c0_22], %28 {strides = array<i32>} : memref<8x128xf32, #tpu.memory_space<vmem>>, vector<8x128xf32>,
    return
  }
  func.func @transform_0(%arg0: i32) -> (i32, i32) {
    %c0_i32 = arith.constant 0 : i32
    %c0_i32_0 = arith.constant 0 : i32
    return %arg0, %c0_i32 : i32, i32
  }
  func.func @transform_1(%arg0: i32) -> (i32, i32) {
    %c0_i32 = arith.constant 0 : i32
    %c0_i32_0 = arith.constant 0 : i32
    %c0_i32_1 = arith.constant 0 : i32
    return %c0_i32, %c0_i32_0 : i32, i32
  }
  func.func @transform_2(%arg0: i32) -> (i32, i32) {
    %c0_i32 = arith.constant 0 : i32
    %c0_i32_0 = arith.constant 0 : i32
    %c0_i32_1 = arith.constant 0 : i32
    return %c0_i32, %c0_i32_0 : i32, i32
  }
  func.func @transform_3(%arg0: i32) -> (i32, i32) {
    %c0_i32 = arith.constant 0 : i32
    %c0_i32_0 = arith.constant 0 : i32
    %c0_i32_1 = arith.constant 0 : i32
    return %c0_i32, %c0_i32_0 : i32, i32
  }
  func.func @transform_4(%arg0: i32) -> (i32, i32) {
    %c0_i32 = arith.constant 0 : i32
    %c0_i32_0 = arith.constant 0 : i32
    %c0_i32_1 = arith.constant 0 : i32
    return %c0_i32, %c0_i32_0 : i32, i32
  }
  func.func @transform_5(%arg0: i32) -> (i32, i32) {
    %c0_i32 = arith.constant 0 : i32
    %c0_i32_0 = arith.constant 0 : i32
    %c0_i32_1 = arith.constant 0 : i32
    return %c0_i32, %c0_i32_0 : i32, i32
  }
  func.func @transform_6(%arg0: i32) -> (i32, i32) {
    %c0_i32 = arith.constant 0 : i32
    %c0_i32_0 = arith.constant 0 : i32
    %c0_i32_1 = arith.constant 0 : i32
    return %c0_i32, %c0_i32_0 : i32, i32
  }
  func.func @transform_7(%arg0: i32) -> (i32, i32) {
    %c0_i32 = arith.constant 0 : i32
    %c0_i32_0 = arith.constant 0 : i32
    %c0_i32_1 = arith.constant 0 : i32
    return %c0_i32, %c0_i32_0 : i32, i32
  }
  func.func @transform_8(%arg0: i32) -> (i32, i32) {
    %c0_i32 = arith.constant 0 : i32
    %c0_i32_0 = arith.constant 0 : i32
    %c0_i32_1 = arith.constant 0 : i32
    return %c0_i32, %c0_i32_0 : i32, i32
  }
  func.func @transform_9(%arg0: i32) -> (i32, i32) {
    %c0_i32 = arith.constant 0 : i32
    %c0_i32_0 = arith.constant 0 : i32
    return %arg0, %c0_i32 : i32, i32
  }
}

</mosaic_0001>

<bundles_post_ra>
// kernel: tpu_custom_call.1
= control target key start
LH: loop header
LB: loop body
LE: loop exit
PB: predicated region body
PF: predicated region fallthrough
CT: control target
= control target key end

     0   :  { %14 = vsyncpa [#allocation3], 0  ;;  %s749_s0 = inlined_call_operand.hbm [shape: f32[8,16], index: 0, kind: input, shape index: {}]   ;;  %s750_s1 = inlined_call_operand.hbm [shape: bf16[16,128], index: 1, kind: input, shape index: {}]   ;;  %s751_s2 = inlined_call_operand.vmem [shape: f32[1,128], index: 2, kind: input, shape index: {}]   ;;  %s752_s3 = inlined_call_operand.hbm [shape: bf16[128,128], index: 3, kind: input, shape index: {}]   ;;  %s753_s4 = inlined_call_operand.vmem [shape: f32[1,128], index: 4, kind: input, shape index: {}]   ;;  %s754_s5 = inlined_call_operand.hbm [shape: bf16[128,128], index: 5, kind: input, shape index: {}]   ;;  %s755_s6 = inlined_call_operand.vmem [shape: f32[1,128], index: 6, kind: input, shape index: {}]   ;;  %s756_s7 = inlined_call_operand.vmem [shape: f32[1,128], index: 7, kind: input, shape index: {}]   ;;  %s757_s8 = inlined_call_operand.vmem [shape: f32[1,128], index: 8, kind: input, shape index: {}]   ;;  %s758_s9 = inlined_call_operand.hbm [shape: f32[8,128], index: 9, kind: output, shape index: {}]  }
   0x1   :  { %15 = vsyncpa [#allocation6], 0 }
   0x2   :  { %16 = vsyncpa [#allocation9], 0 }
   0x3   :  { %17 = vsyncpa [#allocation4], 0  ;;  %s631_s30 = smov [#allocation5]  }
   0x4   :  { %s33_s10 = sshll.u32 %s631_s30, 4  ;;  %s34_s10 = int_to_ptr.vmem [resolvable:$true] %s33_s10 }
   0x5   :  { %s531_s11 = scalar_lea.vmem %s34_s10, 128  ;;  %p536_p1 = scmp.lt.s32.totalorder %s34_s10, %s34_s10 }
   0x6   :  { %p532_p0 = scmp.ne.s32.totalorder %s34_s10, %s531_s11  ;;  %p537_p2 = scmp.lt.s32.totalorder %s531_s11, %s531_s11 }
   0x8   :  { %p538_p3 = por %p537_p2, %p536_p1 }
   0xa   :  { %p539_p4 = pnand %p538_p3, %p532_p0 }
   0xc   :  { %542 = shalt.err (!%p539_p4)
}
   0xd   :  { %s632_s12 = smov 64   ;;  %s633_s13 = smov 4  }
   0xe   :  { %39 = dma.hbm_to_vmem [thread:$0]  %s750_s1, 128, %s34_s10, [#allocation6], %s632_s12, %s632_s12, %s633_s13  }
   0xf   :  { %s634_s16 = smov [#allocation2]   ;;  %s635_s18 = smov [#allocation7]  }
  0x10   :  { %s24_s17 = sshll.u32 %s634_s16, 4  ;;  %s47_s19 = sshll.u32 %s635_s18, 4  ;;  %s25_s17 = int_to_ptr.vmem [resolvable:$true] %s24_s17  ;;  %s48_s19 = int_to_ptr.vmem [resolvable:$true] %s47_s19 }
  0x11   :  { %s551_s20 = scalar_lea.vmem %s25_s17, 128  ;;  %p556_p6 = scmp.lt.s32.totalorder %s25_s17, %s25_s17 }
  0x12   :  { %p552_p5 = scmp.ne.s32.totalorder %s25_s17, %s551_s20  ;;  %p557_p7 = scmp.lt.s32.totalorder %s551_s20, %s551_s20 }
  0x14   :  { %p558_p8 = por %p557_p7, %p556_p6 }
  0x16   :  { %p559_p9 = pnand %p558_p8, %p552_p5 }
  0x18   :  { %562 = shalt.err (!%p559_p9)
}
  0x19   :  { %27 = dma.hbm_to_vmem [thread:$0]  %s749_s0, 128, %s25_s17, [#allocation3]  }
  0x1a   :  { %s571_s23 = scalar_lea.vmem %s48_s19, 1024  ;;  %p576_p11 = scmp.lt.s32.totalorder %s48_s19, %s48_s19 }
  0x1b   :  { %p572_p10 = scmp.ne.s32.totalorder %s48_s19, %s571_s23  ;;  %p577_p12 = scmp.lt.s32.totalorder %s571_s23, %s571_s23 }
  0x1d   :  { %p578_p13 = por %p577_p12, %p576_p11 }
  0x1f   :  { %p579_p0 = pnand %p578_p13, %p572_p10 }
  0x21   :  { %582 = shalt.err (!%p579_p0)
}
  0x22   :  { %53 = dma.hbm_to_vmem [thread:$0]  %s752_s3, 1024, %s48_s19, [#allocation6], %s632_s12, %s632_s12, %s633_s13  }
  0x23   :  { %s636_s25 = smov [#allocation8]  }
  0x24   :  { %s61_s26 = sshll.u32 %s636_s25, 4  ;;  %s62_s26 = int_to_ptr.vmem [resolvable:$true] %s61_s26 }
  0x25   :  { %s591_s27 = scalar_lea.vmem %s62_s26, 1024  ;;  %p596_p2 = scmp.lt.s32.totalorder %s62_s26, %s62_s26 }
  0x26   :  { %p592_p1 = scmp.ne.s32.totalorder %s62_s26, %s591_s27  ;;  %p597_p3 = scmp.lt.s32.totalorder %s591_s27, %s591_s27 }
  0x28   :  { %p598_p4 = por %p597_p3, %p596_p2 }
  0x2a   :  { %p599_p5 = pnand %p598_p4, %p592_p1 }
  0x2c   :  { %602 = shalt.err (!%p599_p5)
}
  0x2d   :  { %67 = dma.hbm_to_vmem [thread:$0]  %s754_s5, 1024, %s62_s26, [#allocation9], %s632_s12, %s632_s12, %s633_s13  }
  0x2e   :  { %623 = dma.done.wait [#allocation3], 128  }
  0x2f   :  { %624 = vsyncadd [#allocation3], 4294967168 }
  0x30   :  { %625 = dma.done.wait [#allocation6], 1152  }
  0x31   :  { %626 = vsyncadd [#allocation6], 4294966144 }
  0x32   :  { %627 = dma.done.wait [#allocation9], 1024  }
  0x33   :  { %628 = vsyncadd [#allocation9], 4294966272  ;;  %v637_v0 = vmov 0.0   ;;  %vm638_vm0 = vmmov 0   ;;  %v506_v1 = vld [vmem:[#allocation5] sm:$0xff]   ;;  %v87_v2 = vld [vmem:[#allocation2] sm:$0xff] }
  0x34   :  { %451 = vmatprep.subr.bf16.mxu0 %v637_v0  ;;  %453 = vmatprep.mubr.msk.bf16.mxu0 %vm638_vm0, %v637_v0  ;;  %v88_v3 = vpack.c.bf16 %v87_v2, %v87_v2  ;;  %vm104_vm1 = vcmask 130048   ;;  %v507_v4 = vld [vmem:[#allocation7 + $0x38] sm:$0xff]   ;;  %v508_v5 = vld [vmem:[#allocation7 + $0x30] sm:$0xff]   ;;  %v509_v6 = vld [vmem:[#allocation7 + $0x28] sm:$0xff]   ;;  %s639_s14 = smov [#allocation10]  }
  0x35   :  { %457 = vmatprep.subr.bf16.mxu1 %v637_v0  ;;  %473 = vmatprep.mubr.msk.bf16.mxu1 %vm638_vm0, %v637_v0  ;;  %v510_v7 = vld [vmem:[#allocation7 + $0x20] sm:$0xff]   ;;  %v511_v8 = vld [vmem:[#allocation7 + $0x18] sm:$0xff]   ;;  %v512_v9 = vld [vmem:[#allocation7 + $0x10] sm:$0xff]   ;;  %s397_s15 = sshll.u32 %s639_s14, 4  ;;  %s398_s15 = int_to_ptr.vmem [resolvable:$true] %s397_s15 }
  0x36   :  { %452 = vmatpush3.bf16.msra.mxu0 %v506_v1  ;;  %458 = vmatpush3.bf16.msra.mxu1 %v507_v4  ;;  %v513_v10 = vld [vmem:[#allocation7 + $0x8] sm:$0xff]   ;;  %v514_v11 = vld [vmem:[#allocation7] sm:$0xff]   ;;  %v515_v12 = vld [vmem:[#allocation8 + $0x38] sm:$0xff]   ;;  %p608_p7 = scmp.lt.s32.totalorder %s398_s15, %s398_s15 }
  0x37   :  { %477 = vmatprep.subr.bf16.mxu0 %v637_v0  ;;  %459 = vmatprep.subr.bf16.mxu1 %v637_v0  ;;  %v516_v13 = vld [vmem:[#allocation8 + $0x30] sm:$0xff]   ;;  %v517_v14 = vld [vmem:[#allocation8 + $0x28] sm:$0xff]   ;;  %v518_v15 = vld [vmem:[#allocation8 + $0x20] sm:$0xff]  }
  0x38   :  { %v519_v16 = vld [vmem:[#allocation8 + $0x18] sm:$0xff]   ;;  %v520_v17 = vld [vmem:[#allocation8 + $0x10] sm:$0xff]   ;;  %v521_v26 = vld [vmem:[#allocation8 + $0x8] sm:$0xff]  }
  0x39   :  { %454 = vmatmul.mubr.msk.bf16.vlgmr.msra.gmra.mxu0 %vm104_vm1, %v88_v3  ;;  %v408_v18 = vld [vmem:[%s751_s2] ss:$0 sm:$0xff]  ;;  %v522_v27 = vld [vmem:[#allocation8] sm:$0xff]  }
  0x3a   :  { %493 = vmatprep.mubr.msk.bf16.mxu0 %vm638_vm0, %v637_v0  ;;  %460 = vmatpush3.bf16.msra.mxu1 %v508_v5  ;;  %v411_v28 = vld [vmem:[%s753_s4] ss:$0 sm:$0xff] }
  0x3b   :  { %461 = vmatprep.subr.bf16.mxu1 %v637_v0  ;;  %478 = vmatpush3.bf16.msra.mxu0 %v515_v12  ;;  %v420_v36 = vld [vmem:[%s755_s6] ss:$0 sm:$0xff]  ;;  %s603_s6 = scalar_lea.vmem %s398_s15, 128 }
  0x3c   :  { %479 = vmatprep.subr.bf16.mxu0 %v637_v0  ;;  %v429_v38 = vld [vmem:[%s756_s7] ss:$0 sm:$0xff]  ;;  %p604_p6 = scmp.ne.s32.totalorder %s398_s15, %s603_s6  ;;  %p609_p8 = scmp.lt.s32.totalorder %s603_s6, %s603_s6 }
  0x3d   :  { %v430_v41 = vld [vmem:[%s757_s8] ss:$0 sm:$0xff] }
  0x3e   :  { %462 = vmatpush3.bf16.msra.mxu1 %v509_v6  ;;  %p610_p9 = por %p609_p8, %p608_p7 }
  0x3f   :  { %463 = vmatprep.subr.bf16.mxu1 %v637_v0  ;;  %480 = vmatpush3.bf16.msra.mxu0 %v516_v13 }
  0x40   :  { %481 = vmatprep.subr.bf16.mxu0 %v637_v0  ;;  %p611_p10 = pnand %p610_p9, %p604_p6 }
  0x42   :  { %464 = vmatpush3.bf16.msra.mxu1 %v510_v7 }
  0x43   :  { %465 = vmatprep.subr.bf16.mxu1 %v637_v0  ;;  %482 = vmatpush3.bf16.msra.mxu0 %v517_v14 }
  0x44   :  { %483 = vmatprep.subr.bf16.mxu0 %v637_v0 }
  0x46   :  { %466 = vmatpush3.bf16.msra.mxu1 %v511_v8 }
  0x47   :  { %467 = vmatprep.subr.bf16.mxu1 %v637_v0  ;;  %484 = vmatpush3.bf16.msra.mxu0 %v518_v15 }
  0x48   :  { %485 = vmatprep.subr.bf16.mxu0 %v637_v0 }
  0x4a   :  { %468 = vmatpush3.bf16.msra.mxu1 %v512_v9 }
  0x4b   :  { %469 = vmatprep.subr.bf16.mxu1 %v637_v0  ;;  %486 = vmatpush3.bf16.msra.mxu0 %v519_v16 }
  0x4c   :  { %487 = vmatprep.subr.bf16.mxu0 %v637_v0 }
  0x4e   :  { %470 = vmatpush3.bf16.msra.mxu1 %v513_v10 }
  0x4f   :  { %471 = vmatprep.subr.bf16.mxu1 %v637_v0  ;;  %488 = vmatpush3.bf16.msra.mxu0 %v520_v17 }
  0x50   :  { %489 = vmatprep.subr.bf16.mxu0 %v637_v0 }
  0x52   :  { %472 = vmatpush3.bf16.msra.mxu1 %v514_v11 }
  0x53   :  { %490 = vmatpush3.bf16.msra.mxu0 %v521_v26 }
  0x54   :  { %491 = vmatprep.subr.bf16.mxu0 %v637_v0 }
  0x57   :  { %492 = vmatpush3.bf16.msra.mxu0 %v522_v27 }
  0xf9   :  { %v142_v19 = vpop.f32.mrf.mxu0 }
  0xfa   :  { %v143_v20 = vadd.f32 %v408_v18, %v142_v19 }
  0xfb   :  { %v455_v21 = vpop.f32.mrf.mxu0 }
  0xfc   :  { %v148_v22 = vmax.f32 %v143_v20, 0.0 }
  0xfd   :  { %v145_v23 = vpop.f32.mrf.mxu0 }
  0xfe   :  { %v149_v24 = vpack.c.bf16 %v148_v22, %v148_v22 }
  0xff   :  { %v456_v25 = vpop.f32.mrf.mxu0 }
 0x100   :  { %474 = vmatmul.mubr.bf16.vlgmr.msra.gmra.mxu1 %v149_v24 }
 0x1c0   :  { %v255_v29 = vpop.f32.mrf.mxu1 }
 0x1c1   :  { %v256_v30 = vadd.f32 %v411_v28, %v255_v29 }
 0x1c2   :  { %v475_v31 = vpop.f32.mrf.mxu1 }
 0x1c3   :  { %v261_v32 = vmax.f32 %v256_v30, 0.0 }
 0x1c4   :  { %v258_v33 = vpop.f32.mrf.mxu1 }
 0x1c5   :  { %v262_v34 = vpack.c.bf16 %v261_v32, %v261_v32 }
 0x1c6   :  { %v476_v35 = vpop.f32.mrf.mxu1 }
 0x1c7   :  { %494 = vmatmul.mubr.bf16.vlgmr.msra.gmra.mxu0 %v262_v34 }
 0x287   :  { %v368_v37 = vpop.f32.mrf.mxu0 }
 0x288   :  { %v369_v39 = vadd.f32 %v420_v36, %v368_v37 }
 0x289   :  { %v495_v40 = vpop.f32.mrf.mxu0 }
 0x28a   :  { %v382_v42 = vmax.f32 %v429_v38, %v369_v39 }
 0x28b   :  { %v371_v43 = vpop.f32.mrf.mxu0 }
 0x28c   :  { %v389_v44 = vmin.f32 %v430_v41, %v382_v42 }
 0x28d   :  { %v496_v45 = vpop.f32.mrf.mxu0 }
 0x28e   :  { %390 = vst [vmem:[#allocation10] sm:$0xff] %v389_v44 }
 0x28f   :  { %614 = shalt.err (!%p611_p10)
}
 0x290   :  { %400 = dma.vmem_to_hbm [thread:$0]  %s398_s15, 128, %s758_s9, [#allocation4]  }
 0x291   :  { %629 = dma.done.wait [#allocation4], 128  }
 0x292   :  { %630 = vsyncadd [#allocation4], 4294967168 }
 0x293   :  { %404 = vsyncpa [#allocation3], 1 }
 0x294   :  { %405 = vsyncpa [#allocation6], 1 }
 0x295   :  { %406 = vsyncpa [#allocation9], 1 }
 0x296   :  { %407 = vsyncpa [#allocation4], 1 }

</bundles_post_ra>
